<compile_context>
chip_gen: v5e
topology: v5e:2x2
jax: 0.10.0
libtpu: 0.0.40
codegen_flags: <defaults>
</compile_context>

<pallas_src>
import jax
import jax.numpy as jnp
from jax.experimental import pallas as pl
from jax.experimental.pallas import tpu as pltpu


def _complexity_kernel(attr_ref, out_ref):
    # attr_ref: (1, TM, N) VMEM tile (native dtype); out_ref: (1, TM) f32.
    a = jnp.abs(attr_ref[...].astype(jnp.float32)) + 1e-8       # C_i, (1, TM, N)
    s = jnp.sum(a, axis=-1)                                      # C,   (1, TM)
    t = jnp.sum(a * jnp.log(a), axis=-1)                         # sum a*log a
    # H = -sum(p*log p), p = a/s  ==  log(s) - (1/s)*sum(a*log a)
    ent = jnp.log(s) - t * pl.reciprocal(s, approx=False)        # (1, TM)
    out_ref[...] = ent.astype(out_ref.dtype)


def _choose_tm(rows, n, itemsize, target_bytes=4 * 1024 * 1024):
    """Pick a row-tile so each input buffer is ~target_bytes (default 4 MiB)."""
    tm = target_bytes // max(1, n * itemsize)
    tm = max((tm // 128) * 128, 128)   # multiple of 128: aligned input block,
    if rows <= tm:                     # lane-dense output stores
        return rows                    # full-extent block: single grid step
    return tm


def complexity_forward(x, attr, mask, *, tm=None):
    """Pallas equivalent of Complexity.forward(x, attr, mask).

    Only `attr` (shape (B, M, N)) participates in the computation, matching
    the PyTorch reference. Returns an array of shape (B, M) float32.
    `tm` optionally overrides the row-tile size (testing / tuning).
    """
    del x, mask  # unused by the reference forward
    B, M, N = attr.shape
    R = B * M
    itemsize = jnp.dtype(attr.dtype).itemsize

    if tm is None:
        TM = _choose_tm(R, N, itemsize)
    else:
        TM = R if tm >= R else max((tm // 128) * 128, 128)

    # Flatten (B, M, N) -> (1, R, N): free metadata-only reshape for a
    # contiguous array; gives uniform row tiles across the batch boundary.
    attr_rows = attr.reshape(1, R, N)
    grid_r = pl.cdiv(R, TM)

    compiler_kwargs = dict(dimension_semantics=("parallel",))
    in_block_bytes = TM * N * itemsize
    if 2 * in_block_bytes > 12 * 1024 * 1024:
        # Very wide rows: raise the scoped-VMEM limit so the double-buffered
        # input tiles fit (capped below v7x's 64 MiB physical VMEM).
        compiler_kwargs["vmem_limit_bytes"] = int(
            min(2 * in_block_bytes + (4 << 20), 60 * 1024 * 1024)
        )

    out = pl.pallas_call(
        _complexity_kernel,
        out_shape=jax.ShapeDtypeStruct((1, R), jnp.float32),
        grid_spec=pltpu.PrefetchScalarGridSpec(
            num_scalar_prefetch=0,
            grid=(grid_r,),
            in_specs=[
                pl.BlockSpec((1, TM, N), lambda i: (0, i, 0)),
            ],
            out_specs=pl.BlockSpec((1, TM), lambda i: (0, i)),
        ),
        compiler_params=pltpu.CompilerParams(**compiler_kwargs),
    )(attr_rows)

    return out.reshape(B, M)


def _reference(attr):
    a = jnp.abs(attr.astype(jnp.float32)) + 1e-8
    s = jnp.sum(a, axis=-1, keepdims=True)
    p = a / s
    return -jnp.sum(p * jnp.log(p), axis=-1)


if __name__ == "__main__":
    key = jax.random.PRNGKey(0)
    kx, kattr, kmask, kattr2, kattr3 = jax.random.split(key, 5)

    # --- Case 1: small shapes, full-extent row block (batch=2, m=8, n=32) ---
    B, M, N = 2, 8, 32
    x = jax.random.normal(kx, (B, M, N), dtype=jnp.float32)                  # unused
    attr = jax.random.normal(kattr, (B, M, N), dtype=jnp.float32)
    mask = (jax.random.uniform(kmask, (B, M)) > 0.5).astype(jnp.float32)     # unused

    out = complexity_forward(x, attr, mask)
    out = jax.block_until_ready(out)
    ref = _reference(attr)
    assert out.shape == (B, M)
    assert jnp.allclose(out, ref, atol=1e-5, rtol=1e-4), (out, ref)

    # --- Case 2: exercise row-tiling + ragged last block (TM=128, R=400) ---
    B2, M2, N2 = 2, 200, 32
    attr2 = jax.random.normal(kattr2, (B2, M2, N2), dtype=jnp.float32)
    out2 = complexity_forward(None, attr2, None, tm=128)
    out2 = jax.block_until_ready(out2)
    ref2 = _reference(attr2)
    assert out2.shape == (B2, M2)
    assert jnp.allclose(out2, ref2, atol=1e-5, rtol=1e-4), (out2, ref2)

    # --- Case 3: bf16 input streamed in native dtype, f32 compute in-kernel ---
    B3, M3, N3 = 2, 8, 32
    attr3 = jax.random.normal(kattr3, (B3, M3, N3), dtype=jnp.bfloat16)
    out3 = complexity_forward(None, attr3, None)
    out3 = jax.block_until_ready(out3)
    ref3 = _reference(attr3)
    assert out3.shape == (B3, M3)
    assert jnp.allclose(out3, ref3, atol=1e-5, rtol=1e-4), (out3, ref3)

    print("KERNEL_OK")
</pallas_src>

<mosaic_0001>
module attributes {stable_mosaic.version = 11 : i64} {
  func.func @_complexity_kernel(%arg0: i32, %arg1: memref<1x16x32xf32, #tpu.memory_space<vmem>>, %arg2: memref<1x16xf32, #tpu.memory_space<vmem>>) attributes {dimension_semantics = [#tpu.dimension_semantics<parallel>], iteration_bounds = array<i64: 1>, scalar_prefetch = 0 : i64, scratch_operands = 0 : i64, tpu.core_type = #tpu.core_type<tc>, window_params = [{transform_indices = @transform_0, window_bounds = array<i64: 1, 16, 32>}, {transform_indices = @transform_1, window_bounds = array<i64: 1, 16>}]} {
    %c0 = arith.constant 0 : index
    %c0_0 = arith.constant 0 : index
    %c0_1 = arith.constant 0 : index
    %0 = vector.load %arg1[%c0, %c0_0, %c0_1] : memref<1x16x32xf32, #tpu.memory_space<vmem>>, vector<1x16x32xf32>
    %1 = math.absf %0 : vector<1x16x32xf32>
    %cst = arith.constant 9.99999993E-9 : f32
    %2 = vector.broadcast %cst : f32 to vector<1x16x32xf32>
    %3 = arith.addf %1, %2 : vector<1x16x32xf32>
    %cst_2 = arith.constant dense<0.000000e+00> : vector<1x16xf32>
    %4 = vector.multi_reduction <add>, %3, %cst_2 [2] : vector<1x16x32xf32> to vector<1x16xf32>
    %5 = math.log %3 : vector<1x16x32xf32>
    %6 = arith.mulf %3, %5 : vector<1x16x32xf32>
    %cst_3 = arith.constant dense<0.000000e+00> : vector<1x16xf32>
    %7 = vector.multi_reduction <add>, %6, %cst_3 [2] : vector<1x16x32xf32> to vector<1x16xf32>
    %8 = math.log %4 : vector<1x16xf32>
    %9 = tpu.reciprocal %4 : vector<1x16xf32> -> vector<1x16xf32>
    %10 = arith.mulf %7, %9 : vector<1x16xf32>
    %11 = arith.subf %8, %10 : vector<1x16xf32>
    %c0_4 = arith.constant 0 : index
    %c0_5 = arith.constant 0 : index
    %12 = vector.load %arg2[%c0_4, %c0_5] : memref<1x16xf32, #tpu.memory_space<vmem>>, vector<1x16xf32>
    tpu.vector_store %arg2[%c0_4, %c0_5], %11 {strides = array<i32>} : memref<1x16xf32, #tpu.memory_space<vmem>>, vector<1x16xf32>,
    return
  }
  func.func @transform_0(%arg0: i32) -> (i32, i32, i32) {
    %c0_i32 = arith.constant 0 : i32
    %c0_i32_0 = arith.constant 0 : i32
    %c0_i32_1 = arith.constant 0 : i32
    return %c0_i32, %arg0, %c0_i32_0 : i32, i32, i32
  }
  func.func @transform_1(%arg0: i32) -> (i32, i32) {
    %c0_i32 = arith.constant 0 : i32
    %c0_i32_0 = arith.constant 0 : i32
    return %c0_i32, %arg0 : i32, i32
  }
}

</mosaic_0001>

<bundles_post_ra>
// kernel: tpu_custom_call.1
= control target key start
LH: loop header
LB: loop body
LE: loop exit
PB: predicated region body
PF: predicated region fallthrough
CT: control target
= control target key end

     0   :  { %6 = vsyncpa [#allocation3], 0  ;;  %s207_s0 = inlined_call_operand.hbm [shape: f32[1,16,32], index: 0, kind: input, shape index: {}]   ;;  %s208_s1 = inlined_call_operand.hbm [shape: f32[1,16], index: 1, kind: output, shape index: {}]  }
   0x1   :  { %7 = vsyncpa [#allocation4], 0  ;;  %s12_s8 = sshll.u32 %s207_s0, 4  ;;  %s183_s9 = smov [#allocation2]   ;;  %s13_s8 = int_to_ptr.hbm [resolvable:$true] %s12_s8 }
   0x2   :  { %s14_s10 = sshll.u32 %s183_s9, 4  ;;  %s184_s11 = smov 128   ;;  %s15_s10 = int_to_ptr.vmem [resolvable:$true] %s14_s10 }
   0x3   :  { %s185_s12 = smov 8  }
   0x4   :  { %20 = dma.hbm_to_vmem [thread:$0]  %s13_s8, 256, %s15_s10, [#allocation3], %s184_s11, %s184_s11, %s185_s12  }
   0x5   :  { %179 = dma.done.wait [#allocation3], 256  }
   0x6   :  { %180 = vsyncadd [#allocation3], 4294967040  ;;  %v25_v0 = vld [vmem:[#allocation2] sm:$0xff]  ;;  %v26_v1 = vld [vmem:[#allocation2 + $0x8] sm:$0xff]  ;;  %vm31_vm0 = vcmask 261120   ;;  %v88_v33 = vlaneseq  ;;  %s186_s0 = smov [#allocation5]  }
   0x7   :  { %v27_v2 = vand.u32 2147483647, %v25_v0  ;;  %v28_v3 = vand.u32 2147483647, %v26_v1  ;;  %s103_s13 = sshll.u32 %s186_s0, 4  ;;  %s105_s16 = sshll.u32 %s208_s1, 4  ;;  %s104_s13 = int_to_ptr.vmem [resolvable:$true] %s103_s13  ;;  %s106_s16 = int_to_ptr.hbm [resolvable:$true] %s105_s16 }
   0x8   :  { %v89_v42 = vand.u32 127, %v88_v33  ;;  %vm93_vm9 = vcmask 130112   ;;  %vm96_vm10 = vcmask 122880  }
   0x9   :  { %v29_v4 = vadd.f32 1e-08, %v27_v2  ;;  %v30_v5 = vadd.f32 1e-08, %v28_v3 }
   0xa   :  { %v91_v47 = vadd.s32 4294967288, %v89_v42 }
   0xb   :  { %v32_v6 = vsel %vm31_vm0, %v29_v4, 0.0  ;;  %119 = vlog2.f32 %v29_v4  ;;  %v35_v8 = vsel %vm31_vm0, %v30_v5, 0.0 }
   0xc   :  { %33 = vadd.xlane.f32.xlu0 %v32_v6  ;;  %121 = vlog2.f32 %v30_v5 }
  0x11   :  { %v120_v7 = vpop.eup %119 }
  0x12   :  { %v122_v9 = vpop.eup %121  ;;  %v39_v10 = vmul.f32 0.6931472, %v120_v7 }
  0x13   :  { %v41_v12 = vmul.f32 0.6931472, %v122_v9 }
  0x14   :  { %36 = vadd.xlane.f32.xlu0 %v35_v8  ;;  %v42_v11 = vmul.f32 %v39_v10, %v29_v4 }
  0x15   :  { %v43_v14 = vmul.f32 %v41_v12, %v30_v5 }
  0x16   :  { %v44_v13 = vsel %vm31_vm0, %v42_v11, 0.0 }
  0x17   :  { %45 = vadd.xlane.f32.xlu1 %v44_v13  ;;  %v47_v15 = vsel %vm31_vm0, %v43_v14, 0.0 }
  0x1f   :  { %48 = vadd.xlane.f32.xlu1 %v47_v15 }
  0x7f   :  { %v34_v16 = vpop.xlane.xlu0 %33 }
  0x80   :  { %123 = vrcp.f32 %v34_v16  ;;  %v65_v23 = vand.u32 2147483648, %v34_v16  ;;  %vm59_vm2 = vweird.f32 %v34_v16  ;;  %v63_v25 = vand.u32 2147483647, %v34_v16 }
  0x82   :  { %v66_v29 = vor.u32 1.1754944e-38, %v65_v23  ;;  %vm64_vm4 = vcmp.eq.f32.partialorder %v63_v25, 8.507059e+37 }
  0x86   :  { %v124_v17 = vpop.eup %123 }
  0x87   :  { %v55_v18 = vmul.f32 %v124_v17, %v34_v16  ;;  %v37_v19 = vpop.xlane.xlu0 %36  ;;  %vm60_vm1 = vweird.f32 %v124_v17 }
  0x88   :  { %125 = vrcp.f32 %v37_v19  ;;  %vm61_vm3 = vmor %vm59_vm2, %vm60_vm1  ;;  %v79_v32 = vand.u32 2147483648, %v37_v19  ;;  %v77_v35 = vand.u32 2147483647, %v37_v19  ;;  %vm73_vm6 = vweird.f32 %v37_v19 }
  0x89   :  { %v56_v20 = vsub.f32 1.0, %v55_v18  ;;  %127 = vlog2.f32 %v34_v16 }
  0x8a   :  { %v46_v22 = vpop.xlane.xlu1 %45  ;;  %129 = vlog2.f32 %v37_v19  ;;  %v80_v41 = vor.u32 1.1754944e-38, %v79_v32  ;;  %vm78_vm8 = vcmp.eq.f32.partialorder %v77_v35, 8.507059e+37 }
  0x8b   :  { %v57_v21 = vmul.f32 %v124_v17, %v56_v20 }
  0x8d   :  { %v58_v24 = vadd.f32 %v124_v17, %v57_v21 }
  0x8e   :  { %v126_v26 = vpop.eup %125 }
  0x8f   :  { %v69_v27 = vmul.f32 %v126_v26, %v37_v19  ;;  %v62_v28 = vsel %vm61_vm3, %v124_v17, %v58_v24  ;;  %vm74_vm5 = vweird.f32 %v126_v26  ;;  %v128_v36 = vpop.eup %127 }
  0x90   :  { %v67_v31 = vsel %vm64_vm4, %v66_v29, %v62_v28  ;;  %v130_v39 = vpop.eup %129  ;;  %vm75_vm7 = vmor %vm73_vm6, %vm74_vm5  ;;  %v51_v43 = vmul.f32 0.6931472, %v128_v36 }
  0x91   :  { %v70_v30 = vsub.f32 1.0, %v69_v27  ;;  %v82_v37 = vmul.f32 %v67_v31, %v46_v22  ;;  %v53_v48 = vmul.f32 0.6931472, %v130_v39 }
  0x92   :  { %v49_v40 = vpop.xlane.xlu1 %48 }
  0x93   :  { %v71_v34 = vmul.f32 %v126_v26, %v70_v30  ;;  %v84_v46 = vsub.f32 %v51_v43, %v82_v37 }
  0x95   :  { %v72_v38 = vadd.f32 %v126_v26, %v71_v34  ;;  %v90_v51 = vperm.slane %v84_v46, %v89_v42 }
  0x97   :  { %v76_v44 = vsel %vm75_vm7, %v126_v26, %v72_v38 }
  0x98   :  { %v81_v45 = vsel %vm78_vm8, %v80_v41, %v76_v44 }
  0x99   :  { %v83_v49 = vmul.f32 %v81_v45, %v49_v40 }
  0x9b   :  { %v85_v50 = vsub.f32 %v53_v48, %v83_v49 }
  0x9d   :  { %v92_v52 = vperm.slane %v85_v50, %v91_v47 }
  0x9f   :  { %v94_v53 = vsel %vm93_vm9, %v92_v52, %v90_v51 }
  0xa0   :  { %97 = vst.msk [vmem:[#allocation5] sm:$0x1] %vm96_vm10, %v94_v53 }
  0xa1   :  { %108 = dma.vmem_to_hbm [thread:$0]  %s104_s13, 16, %s106_s16, [#allocation4]  }
  0xa2   :  { %181 = dma.done.wait [#allocation4], 16  }
  0xa3   :  { %182 = vsyncadd [#allocation4], 4294967280 }
  0xa4   :  { %113 = vsyncpa [#allocation3], 1 }
  0xa5   :  { %114 = vsyncpa [#allocation4], 1 }

</bundles_post_ra>
